<compile_context>
chip_gen: v5e
topology: v5e:2x2
jax: 0.10.0
libtpu: 0.0.40
codegen_flags: <defaults>
</compile_context>

<pallas_src>
import functools

import jax
import jax.numpy as jnp
from jax.experimental import pallas as pl
from jax.experimental.pallas import tpu as pltpu


# ----------------------------- tuning knobs ---------------------------------

def _query_vmem_limit_bytes():
    """Scoped-VMEM limit: ~3/4 of physical VMEM, capped; safe static fallback."""
    try:
        info = pltpu.get_tpu_info()
        cap = getattr(info, "vmem_capacity_bytes", None)
        if cap:
            return int(min(cap * 3 // 4, 96 * 1024 * 1024))
    except Exception:
        pass
    # Safe on v5e/v6e (128 MiB physical) and v7x (64 MiB physical).
    return 48 * 1024 * 1024


_VMEM_LIMIT_BYTES = _query_vmem_limit_bytes()
# Pass-2 footprint ~ 4x tile (double-buffered in + out); keep comfortable slack.
_TILE_BYTES_TARGET = min(max(_VMEM_LIMIT_BYTES // 6, 4 * 1024 * 1024),
                         12 * 1024 * 1024)
_FUSED_VMEM_BUDGET = _VMEM_LIMIT_BYTES // 2

_COMPILER_PARAMS = pltpu.CompilerParams(
    dimension_semantics=("parallel",),
    vmem_limit_bytes=_VMEM_LIMIT_BYTES,
)


def _sublane_multiple(itemsize):
    """Native second-minor tile multiple: 8 for f32, 16 for bf16, 32 for int8."""
    if itemsize >= 4:
        return 8
    if itemsize == 2:
        return 16
    return 32


def _fused_fits(n, cg, hw, itemsize, budget):
    """Conservative VMEM estimate for the fused path: double-buffered in + out
    blocks plus ~3 f32-sized in-kernel temporaries (upcast / centered / result)."""
    block_elems = n * cg * hw
    bytes_io = 4 * block_elems * itemsize
    bytes_tmp = 3 * block_elems * 4
    return bytes_io + bytes_tmp <= budget


def _pick_channel_group(n, c, hw, itemsize, budget):
    """Largest channel-group size that divides C, respects the dtype-native
    sublane multiple (or equals C), and fits the fused VMEM budget.
    Returns None -> use the two-pass fallback."""
    base = _sublane_multiple(itemsize)
    if c <= base:
        return c if _fused_fits(n, c, hw, itemsize, budget) else None
    if c % base != 0:
        return None
    best = None
    cand = base
    while cand <= c:
        if c % cand == 0 and _fused_fits(n, cand, hw, itemsize, budget):
            best = cand
        cand += base
    return best


def _pick_row_tile(nr, hw, itemsize, tile_bytes):
    """Rows per tile for the two-pass path: dtype-native multiple (or all rows),
    sized to ~tile_bytes per pipeline buffer."""
    mult = _sublane_multiple(itemsize)
    rows = tile_bytes // max(hw * itemsize, 1)
    if rows >= nr or nr <= mult:
        return nr
    return max((rows // mult) * mult, mult)


# ------------------------------- kernels ------------------------------------

def _bn_fused_kernel(x_ref, p_ref, y_ref, mv_ref, *, eps, inv_m):
    """Fused stats + normalize for one channel group.

    x_ref:  (N, cg, HW)   input block
    p_ref:  (cg, 2)       [gamma, beta] per channel
    y_ref:  (N, cg, HW)   normalized output
    mv_ref: (cg, 2)       [batch_mean, batch_var] per channel (f32)
    """
    x = x_ref[...].astype(jnp.float32)                         # (N, cg, HW)
    # Per-channel mean, then *centered* variance (cancellation-robust; the
    # tile is already resident in VMEM so the second sweep costs no HBM).
    row_sum = jnp.sum(x, axis=2, keepdims=True)                # (N, cg, 1)
    mean = jnp.sum(row_sum, axis=0, keepdims=True) * inv_m     # (1, cg, 1)
    xc = x - mean
    row_sq = jnp.sum(xc * xc, axis=2, keepdims=True)           # (N, cg, 1)
    var = jnp.sum(row_sq, axis=0, keepdims=True) * inv_m       # (1, cg, 1)

    cg = x.shape[1]
    gamma = p_ref[:, 0:1].reshape(1, cg, 1)
    beta = p_ref[:, 1:2].reshape(1, cg, 1)
    a = gamma * jax.lax.rsqrt(var + eps)
    y_ref[...] = (xc * a + beta).astype(y_ref.dtype)

    mv_ref[:, 0:1] = mean.reshape(cg, 1)
    mv_ref[:, 1:2] = var.reshape(cg, 1)


def _bn_stats_kernel(x_ref, stats_ref):
    """Two-pass fallback, pass 1: per-row sum / sumsq over the lane (H*W) axis.

    x_ref:     (TR, HW)  tile of the (N*C, H*W) slab
    stats_ref: (TR, 2)   [sum(x), sum(x^2)] per row (single merged output)
    Rows are independent; in a partial last tile the padded (garbage) rows only
    produce out-of-bounds rows that Pallas masks on writeback, and the O(C)
    combine below reads only the first N*C rows -- do not change this without
    revisiting that invariant.
    """
    x = x_ref[...].astype(jnp.float32)
    stats_ref[:, 0:1] = jnp.sum(x, axis=1, keepdims=True)
    stats_ref[:, 1:2] = jnp.sum(x * x, axis=1, keepdims=True)


def _bn_norm_kernel(x_ref, ab_ref, y_ref):
    """Two-pass fallback, pass 2: y = x * a_row + b_row (per-row scale/shift)."""
    x = x_ref[...].astype(jnp.float32)
    a = ab_ref[:, 0:1]
    b = ab_ref[:, 1:2]
    y_ref[...] = (x * a + b).astype(y_ref.dtype)


# ------------------------------ wrappers -------------------------------------

def _bn_fused(x_nchw, weight, bias, eps, cg):
    n, c, h, w = x_nchw.shape
    hw = h * w
    x3d = x_nchw.reshape(n, c, hw)           # contiguous reshape, no transpose
    params = jnp.stack(
        [weight.astype(jnp.float32), bias.astype(jnp.float32)], axis=1)  # (C,2)

    kernel = functools.partial(_bn_fused_kernel,
                               eps=float(eps), inv_m=1.0 / float(n * hw))
    y3d, mv = pl.pallas_call(
        kernel,
        out_shape=(
            jax.ShapeDtypeStruct((n, c, hw), x3d.dtype),
            jax.ShapeDtypeStruct((c, 2), jnp.float32),
        ),
        grid=(c // cg,),
        in_specs=[
            pl.BlockSpec((n, cg, hw), lambda i: (0, i, 0)),
            pl.BlockSpec((cg, 2), lambda i: (i, 0)),
        ],
        out_specs=(
            pl.BlockSpec((n, cg, hw), lambda i: (0, i, 0)),
            pl.BlockSpec((cg, 2), lambda i: (i, 0)),
        ),
        compiler_params=_COMPILER_PARAMS,
    )(x3d, params)

    return y3d.reshape(n, c, h, w), mv[:, 0], mv[:, 1]


def _bn_two_pass(x_nchw, weight, bias, eps):
    n, c, h, w = x_nchw.shape
    hw = h * w
    nr = n * c
    m = n * hw

    x2d = x_nchw.reshape(nr, hw)             # contiguous reshape, no transpose
    itemsize = jnp.dtype(x2d.dtype).itemsize
    tr = _pick_row_tile(nr, hw, itemsize, _TILE_BYTES_TARGET)
    num_tiles = pl.cdiv(nr, tr)

    # ---- Pass 1: streaming per-row sum / sumsq (single merged output) -------
    stats = pl.pallas_call(
        _bn_stats_kernel,
        out_shape=jax.ShapeDtypeStruct((nr, 2), jnp.float32),
        grid=(num_tiles,),
        in_specs=[pl.BlockSpec((tr, hw), lambda i: (i, 0))],
        out_specs=pl.BlockSpec((tr, 2), lambda i: (i, 0)),
        compiler_params=_COMPILER_PARAMS,
    )(x2d)

    # ---- Tiny per-channel combine (O(C) work, plain JAX) ---------------------
    sum_c = jnp.sum(stats[:, 0].reshape(n, c), axis=0)        # (C,)
    sq_c = jnp.sum(stats[:, 1].reshape(n, c), axis=0)         # (C,)
    inv_m = 1.0 / float(m)
    mean = sum_c * inv_m
    # NOTE: E[x^2]-E[x]^2 can lose precision for huge N*H*W with |mean|>>std;
    # the fused path (centered variance) is preferred whenever it fits VMEM.
    var = jnp.maximum(sq_c * inv_m - mean * mean, 0.0)
    inv_std = jax.lax.rsqrt(var + jnp.float32(eps))
    a_c = weight.astype(jnp.float32) * inv_std                 # (C,)
    b_c = bias.astype(jnp.float32) - mean * a_c                # (C,)
    # Per-row (row = n*C + c) scale/shift, merged into one (nr, 2) stream.
    ab_rows = jnp.stack([jnp.tile(a_c, n), jnp.tile(b_c, n)], axis=1)  # (nr, 2)

    # ---- Pass 2: streaming normalize -----------------------------------------
    y2d = pl.pallas_call(
        _bn_norm_kernel,
        out_shape=jax.ShapeDtypeStruct((nr, hw), x2d.dtype),
        grid=(num_tiles,),
        in_specs=[
            pl.BlockSpec((tr, hw), lambda i: (i, 0)),
            pl.BlockSpec((tr, 2), lambda i: (i, 0)),
        ],
        out_specs=pl.BlockSpec((tr, hw), lambda i: (i, 0)),
        compiler_params=_COMPILER_PARAMS,
    )(x2d, ab_rows)

    return y2d.reshape(n, c, h, w), mean, var


def _batch_norm_2d_pallas(x_nchw, weight, bias, eps, force_two_pass=False):
    """Training-mode BatchNorm2d forward. Returns (y_nchw, batch_mean, batch_var)."""
    n, c, h, w = x_nchw.shape
    hw = h * w
    itemsize = jnp.dtype(x_nchw.dtype).itemsize
    cg = None
    if not force_two_pass:
        cg = _pick_channel_group(n, c, hw, itemsize, _FUSED_VMEM_BUDGET)
    if cg is not None:
        return _bn_fused(x_nchw, weight, bias, eps, cg)
    return _bn_two_pass(x_nchw, weight, bias, eps)


# ------------------------------ module ---------------------------------------

class ResAwareBatchNorm2dPallas:
    """JAX/Pallas counterpart of AbstractResAwareBatchNorm (BatchNorm2d flavor).

    Holds one set of BN parameters per resolution divisor; forward() applies
    the currently selected layer's batch norm via the Pallas kernels.
    """

    def __init__(self, num_channels, res_divs=(1.0,), resdiv_mask=(True,),
                 eps=1e-5, momentum=0.1, key=None):
        self.res_divs = tuple(res_divs)
        self.resdiv_mask = tuple(resdiv_mask)
        self.eps = eps
        self.momentum = momentum
        self.cur_idx = None
        if key is None:
            key = jax.random.PRNGKey(0)
        self.layers = []
        for _ in self.res_divs:
            key, kw, kb = jax.random.split(key, 3)
            self.layers.append({
                # nn.BatchNorm2d default is weight=1, bias=0; perturbed
                # deterministically so the test is nontrivial.
                "weight": 1.0 + 0.1 * jax.random.normal(kw, (num_channels,), jnp.float32),
                "bias": 0.1 * jax.random.normal(kb, (num_channels,), jnp.float32),
                "running_mean": jnp.zeros((num_channels,), jnp.float32),
                "running_var": jnp.ones((num_channels,), jnp.float32),
            })

    def setResIndex(self, idx):
        self.cur_idx = idx

    def forward(self, x_nchw):
        layer = self.layers[self.cur_idx]
        y, batch_mean, batch_var = _batch_norm_2d_pallas(
            x_nchw, layer["weight"], layer["bias"], self.eps)
        # Running-stat update (training-mode side effect), plain-JAX glue.
        n, c, h, w = x_nchw.shape
        m = n * h * w
        unbiased_var = batch_var * (m / max(m - 1, 1))
        mom = self.momentum
        layer["running_mean"] = (1 - mom) * layer["running_mean"] + mom * batch_mean
        layer["running_var"] = (1 - mom) * layer["running_var"] + mom * unbiased_var
        return y

    # TODO(synk): interpolate() is numpy polyfit over layer parameters (module
    # management, not a tensor hot path) — no Pallas equivalent needed.

    def __call__(self, x):
        return self.forward(x)


# ------------------------------ reference / test ------------------------------

def _reference_bn(x_nchw, weight, bias, eps):
    x = x_nchw.astype(jnp.float32)
    mean = jnp.mean(x, axis=(0, 2, 3), keepdims=True)
    var = jnp.mean((x - mean) ** 2, axis=(0, 2, 3), keepdims=True)
    y = (x - mean) / jnp.sqrt(var + eps)
    return (y * weight.reshape(1, -1, 1, 1) + bias.reshape(1, -1, 1, 1)).astype(x_nchw.dtype)


if __name__ == "__main__":
    key = jax.random.PRNGKey(0)
    kx, kp = jax.random.split(key)

    N, C, H, W = 2, 4, 16, 16
    x = jax.random.normal(kx, (N, C, H, W), jnp.float32) * 2.0 + 0.5

    bn = ResAwareBatchNorm2dPallas(
        num_channels=C, res_divs=(1.0, 2.0), resdiv_mask=(True, True), key=kp)
    bn.setResIndex(0)

    # Fused single-pass path (preferred).
    y = jax.block_until_ready(bn(x))

    layer = bn.layers[bn.cur_idx]
    y_ref = _reference_bn(x, layer["weight"], layer["bias"], bn.eps)
    assert y.shape == x.shape and y.dtype == x.dtype
    assert jnp.allclose(y, y_ref, atol=1e-4, rtol=1e-4)

    # Also exercise the streaming two-pass fallback path.
    y2, _, _ = _batch_norm_2d_pallas(
        x, layer["weight"], layer["bias"], bn.eps, force_two_pass=True)
    y2 = jax.block_until_ready(y2)
    assert jnp.allclose(y2, y_ref, atol=1e-4, rtol=1e-4)

    print("KERNEL_OK")
</pallas_src>

<mosaic_0001>
module attributes {stable_mosaic.version = 11 : i64} {
  func.func @_bn_fused_kernel(%arg0: i32, %arg1: memref<2x4x256xf32, #tpu.memory_space<vmem>>, %arg2: memref<4x2xf32, #tpu.memory_space<vmem>>, %arg3: memref<2x4x256xf32, #tpu.memory_space<vmem>>, %arg4: memref<4x2xf32, #tpu.memory_space<vmem>>) attributes {dimension_semantics = [#tpu.dimension_semantics<parallel>], iteration_bounds = array<i64: 1>, scalar_prefetch = 0 : i64, scratch_operands = 0 : i64, tpu.core_type = #tpu.core_type<tc>, window_params = [{transform_indices = @transform_0, window_bounds = array<i64: 2, 4, 256>}, {transform_indices = @transform_1, window_bounds = array<i64: 4, 2>}, {transform_indices = @transform_2, window_bounds = array<i64: 2, 4, 256>}, {transform_indices = @transform_3, window_bounds = array<i64: 4, 2>}]} {
    %c0 = arith.constant 0 : index
    %c0_0 = arith.constant 0 : index
    %c0_1 = arith.constant 0 : index
    %0 = vector.load %arg1[%c0, %c0_0, %c0_1] : memref<2x4x256xf32, #tpu.memory_space<vmem>>, vector<2x4x256xf32>
    %cst = arith.constant dense<0.000000e+00> : vector<2x4xf32>
    %1 = vector.multi_reduction <add>, %0, %cst [2] : vector<2x4x256xf32> to vector<2x4xf32>
    %2 = vector.shape_cast %1 : vector<2x4xf32> to vector<2x4x1xf32>
    %cst_2 = arith.constant dense<0.000000e+00> : vector<4x1xf32>
    %3 = vector.multi_reduction <add>, %2, %cst_2 [0] : vector<2x4x1xf32> to vector<4x1xf32>
    %4 = vector.shape_cast %3 : vector<4x1xf32> to vector<1x4x1xf32>
    %cst_3 = arith.constant 0.001953125 : f32
    %5 = vector.broadcast %cst_3 : f32 to vector<1x4x1xf32>
    %6 = arith.mulf %4, %5 : vector<1x4x1xf32>
    %7 = vector.broadcast %6 : vector<1x4x1xf32> to vector<2x4x256xf32>
    %8 = arith.subf %0, %7 : vector<2x4x256xf32>
    %9 = arith.mulf %8, %8 : vector<2x4x256xf32>
    %cst_4 = arith.constant dense<0.000000e+00> : vector<2x4xf32>
    %10 = vector.multi_reduction <add>, %9, %cst_4 [2] : vector<2x4x256xf32> to vector<2x4xf32>
    %11 = vector.shape_cast %10 : vector<2x4xf32> to vector<2x4x1xf32>
    %cst_5 = arith.constant dense<0.000000e+00> : vector<4x1xf32>
    %12 = vector.multi_reduction <add>, %11, %cst_5 [0] : vector<2x4x1xf32> to vector<4x1xf32>
    %13 = vector.shape_cast %12 : vector<4x1xf32> to vector<1x4x1xf32>
    %cst_6 = arith.constant 0.001953125 : f32
    %14 = vector.broadcast %cst_6 : f32 to vector<1x4x1xf32>
    %15 = arith.mulf %13, %14 : vector<1x4x1xf32>
    %c0_7 = arith.constant 0 : index
    %c0_8 = arith.constant 0 : index
    %16 = vector.load %arg2[%c0_7, %c0_8] : memref<4x2xf32, #tpu.memory_space<vmem>>, vector<4x1xf32>
    %17 = vector.shape_cast %16 : vector<4x1xf32> to vector<1x4x1xf32>
    %c0_9 = arith.constant 0 : index
    %c1 = arith.constant 1 : index
    %18 = vector.load %arg2[%c0_9, %c1] : memref<4x2xf32, #tpu.memory_space<vmem>>, vector<4x1xf32>
    %19 = vector.shape_cast %18 : vector<4x1xf32> to vector<1x4x1xf32>
    %cst_10 = arith.constant 9.99999974E-6 : f32
    %20 = vector.broadcast %cst_10 : f32 to vector<1x4x1xf32>
    %21 = arith.addf %15, %20 : vector<1x4x1xf32>
    %22 = math.rsqrt %21 : vector<1x4x1xf32>
    %23 = arith.mulf %17, %22 : vector<1x4x1xf32>
    %24 = vector.broadcast %23 : vector<1x4x1xf32> to vector<2x4x256xf32>
    %25 = arith.mulf %8, %24 : vector<2x4x256xf32>
    %26 = vector.broadcast %19 : vector<1x4x1xf32> to vector<2x4x256xf32>
    %27 = arith.addf %25, %26 : vector<2x4x256xf32>
    %c0_11 = arith.constant 0 : index
    %c0_12 = arith.constant 0 : index
    %c0_13 = arith.constant 0 : index
    %28 = vector.load %arg3[%c0_11, %c0_12, %c0_13] : memref<2x4x256xf32, #tpu.memory_space<vmem>>, vector<2x4x256xf32>
    tpu.vector_store %arg3[%c0_11, %c0_12, %c0_13], %27 {strides = array<i32>} : memref<2x4x256xf32, #tpu.memory_space<vmem>>, vector<2x4x256xf32>,
    %29 = vector.shape_cast %6 : vector<1x4x1xf32> to vector<4x1xf32>
    %c0_14 = arith.constant 0 : index
    %c0_15 = arith.constant 0 : index
    %30 = vector.load %arg4[%c0_14, %c0_15] : memref<4x2xf32, #tpu.memory_space<vmem>>, vector<4x1xf32>
    tpu.vector_store %arg4[%c0_14, %c0_15], %29 {strides = array<i32>} : memref<4x2xf32, #tpu.memory_space<vmem>>, vector<4x1xf32>,
    %31 = vector.shape_cast %15 : vector<1x4x1xf32> to vector<4x1xf32>
    %c0_16 = arith.constant 0 : index
    %c1_17 = arith.constant 1 : index
    %32 = vector.load %arg4[%c0_16, %c1_17] : memref<4x2xf32, #tpu.memory_space<vmem>>, vector<4x1xf32>
    tpu.vector_store %arg4[%c0_16, %c1_17], %31 {strides = array<i32>} : memref<4x2xf32, #tpu.memory_space<vmem>>, vector<4x1xf32>,
    return
  }
  func.func @transform_0(%arg0: i32) -> (i32, i32, i32) {
    %c0_i32 = arith.constant 0 : i32
    %c0_i32_0 = arith.constant 0 : i32
    %c0_i32_1 = arith.constant 0 : i32
    return %c0_i32, %arg0, %c0_i32_0 : i32, i32, i32
  }
  func.func @transform_1(%arg0: i32) -> (i32, i32) {
    %c0_i32 = arith.constant 0 : i32
    %c0_i32_0 = arith.constant 0 : i32
    return %arg0, %c0_i32 : i32, i32
  }
  func.func @transform_2(%arg0: i32) -> (i32, i32, i32) {
    %c0_i32 = arith.constant 0 : i32
    %c0_i32_0 = arith.constant 0 : i32
    %c0_i32_1 = arith.constant 0 : i32
    return %c0_i32, %arg0, %c0_i32_0 : i32, i32, i32
  }
  func.func @transform_3(%arg0: i32) -> (i32, i32) {
    %c0_i32 = arith.constant 0 : i32
    %c0_i32_0 = arith.constant 0 : i32
    return %arg0, %c0_i32 : i32, i32
  }
}

</mosaic_0001>

<bundles_post_ra>
// kernel: tpu_custom_call.1
= control target key start
LH: loop header
LB: loop body
LE: loop exit
PB: predicated region body
PF: predicated region fallthrough
CT: control target
= control target key end

     0   :  { %9 = vsyncpa [#allocation3], 0  ;;  %s285_s0 = inlined_call_operand.hbm [shape: f32[2,4,256], index: 0, kind: input, shape index: {}]   ;;  %s286_s1 = inlined_call_operand.vmem [shape: f32[4,2], index: 1, kind: input, shape index: {}]   ;;  %s287_s2 = inlined_call_operand.hbm [shape: f32[2,4,256], index: 2, kind: output, shape index: {0}]   ;;  %s288_s3 = inlined_call_operand.vmem [shape: f32[4,2], index: 3, kind: output, shape index: {1}]  }
   0x1   :  { %10 = vsyncpa [#allocation4], 0  ;;  %s15_s14 = sshll.u32 %s285_s0, 4  ;;  %s225_s15 = smov [#allocation2]   ;;  %s16_s14 = int_to_ptr.hbm [resolvable:$true] %s15_s14 }
   0x2   :  { %s17_s16 = sshll.u32 %s225_s15, 4  ;;  %s226_s17 = smov 128   ;;  %s18_s16 = int_to_ptr.vmem [resolvable:$true] %s17_s16 }
   0x3   :  { %s227_s18 = smov 8  }
   0x4   :  { %23 = dma.hbm_to_vmem [thread:$0]  %s16_s14, 256, %s18_s16, [#allocation3], %s226_s17, %s226_s17, %s227_s18  }
   0x5   :  { %221 = dma.done.wait [#allocation3], 256  }
   0x6   :  { %222 = vsyncadd [#allocation3], 4294967040  ;;  %v30_v0 = vld [vmem:[#allocation2] sm:$0xff]  ;;  %v31_v1 = vld [vmem:[#allocation2 + $0x8] sm:$0xff]  ;;  %vm45_vm0 = vcmask 1043456   ;;  %vm134_vm1 = vcmask 3072  }
   0x7   :  { %34 = vst [vmem:[#allocation1] ss:$2 sm:$0xff] %v30_v0  ;;  %v228_v13 = vmov 839922192   ;;  %v229_v36 = vmov 0   ;;  %v230_v38 = vmov 1  }
   0x8   :  { %38 = vst [vmem:[#allocation1 + $0x10] ss:$2 sm:$0xff] %v31_v1  ;;  %v62_v14 = vunpack.c.l.s4 %v228_v13  ;;  %168 = vset.pattern.permute.xlu2 %v229_v36  ;;  %170 = vset.pattern.permute.xlu0 %v230_v38  ;;  %vm136_vm2 = vcmask 11272   ;;  %v97_v50 = vld [vmem:[%s286_s1] sm:$0xf]  ;;  %s144_s1 = sshll.u32 %s287_s2, 4  ;;  %s145_s1 = int_to_ptr.hbm [resolvable:$true] %s144_s1 }
   0xa   :  { %v63_v18 = vunpack.c.0.s8 %v62_v14 }
   0xe   :  { %v35_v2 = vld.sshfl [vmem:[#allocation1] sm:$0xff pattern:$0x75316420]  ;;  %v36_v3 = vld.sshfl [vmem:[#allocation1 + $0x8] sm:$0xff pattern:$0x75316420] }
   0xf   :  { %v46_v4 = vsel %vm45_vm0, %v35_v2, 0.0  ;;  %v47_v5 = vsel %vm45_vm0, %v36_v3, 0.0  ;;  %v39_v7 = vld.sshfl [vmem:[#allocation1 + $0x10] sm:$0xff pattern:$0x75316420] }
  0x10   :  { %v48_v6 = vadd.f32 %v47_v5, %v46_v4  ;;  %v40_v8 = vld.sshfl [vmem:[#allocation1 + $0x18] sm:$0xff pattern:$0x75316420]  ;;  %v51_v9 = vsel %vm45_vm0, %v39_v7, 0.0 }
  0x11   :  { %v52_v10 = vsel %vm45_vm0, %v40_v8, 0.0 }
  0x12   :  { %49 = vadd.xlane.f32.xlu0 %v48_v6  ;;  %v53_v11 = vadd.f32 %v52_v10, %v51_v9 }
  0x1a   :  { %54 = vadd.xlane.f32.xlu0 %v53_v11 }
  0x85   :  { %v50_v12 = vpop.xlane.xlu0 %49 }
  0x86   :  { %v56_v16 = vsel %vm45_vm0, %v50_v12, 0.0 }
  0x8d   :  { %v55_v15 = vpop.xlane.xlu0 %54 }
  0x8e   :  { %v57_v17 = vsel %vm45_vm0, %v55_v15, 0.0 }
  0x8f   :  { %v58_v19 = vadd.f32 %v57_v17, %v56_v16 }
  0x91   :  { %v59_v20 = vmul.f32 0.001953125, %v58_v19 }
  0x93   :  { %v64_v21 = vperm.slane %v59_v20, %v63_v18  ;;  %135 = vst.msk [vmem:[%s288_s3] sm:$0xf] %vm134_vm1, %v59_v20 }
  0x95   :  { %v66_v22 = vsub.f32 %v30_v0, %v64_v21  ;;  %v67_v23 = vsub.f32 %v31_v1, %v64_v21 }
  0x97   :  { %v68_v24 = vmul.f32 %v66_v22, %v66_v22  ;;  %v69_v25 = vmul.f32 %v67_v23, %v67_v23 }
  0x99   :  { %72 = vst [vmem:[#allocation1] ss:$2 sm:$0xff] %v68_v24 }
  0x9a   :  { %76 = vst [vmem:[#allocation1 + $0x10] ss:$2 sm:$0xff] %v69_v25 }
  0xa0   :  { %v73_v26 = vld.sshfl [vmem:[#allocation1] sm:$0xff pattern:$0x75316420]  ;;  %v74_v27 = vld.sshfl [vmem:[#allocation1 + $0x8] sm:$0xff pattern:$0x75316420] }
  0xa1   :  { %v83_v28 = vsel %vm45_vm0, %v73_v26, 0.0  ;;  %v84_v29 = vsel %vm45_vm0, %v74_v27, 0.0  ;;  %v77_v31 = vld.sshfl [vmem:[#allocation1 + $0x10] sm:$0xff pattern:$0x75316420] }
  0xa2   :  { %v85_v30 = vadd.f32 %v84_v29, %v83_v28  ;;  %v78_v32 = vld.sshfl [vmem:[#allocation1 + $0x18] sm:$0xff pattern:$0x75316420]  ;;  %v88_v33 = vsel %vm45_vm0, %v77_v31, 0.0 }
  0xa3   :  { %v89_v34 = vsel %vm45_vm0, %v78_v32, 0.0 }
  0xa4   :  { %86 = vadd.xlane.f32.xlu1 %v85_v30  ;;  %v90_v35 = vadd.f32 %v89_v34, %v88_v33 }
  0xac   :  { %91 = vadd.xlane.f32.xlu1 %v90_v35 }
 0x117   :  { %v87_v37 = vpop.xlane.xlu1 %86 }
 0x118   :  { %v93_v40 = vsel %vm45_vm0, %v87_v37, 0.0 }
 0x11f   :  { %v92_v39 = vpop.xlane.xlu1 %91 }
 0x120   :  { %v94_v41 = vsel %vm45_vm0, %v92_v39, 0.0 }
 0x121   :  { %v95_v42 = vadd.f32 %v94_v41, %v93_v40 }
 0x123   :  { %v96_v43 = vmul.f32 0.001953125, %v95_v42 }
 0x125   :  { %v98_v44 = vadd.f32 1e-05, %v96_v43  ;;  %137 = vst.msk [vmem:[%s288_s3] sm:$0xf] %vm136_vm2, %v96_v43  ;;  %s231_s3 = smov [#allocation5]  }
 0x126   :  { %s142_s24 = sshll.u32 %s231_s3, 4  ;;  %s143_s24 = int_to_ptr.vmem [resolvable:$true] %s142_s24 }
 0x127   :  { %171 = vrsqrt.f32 %v98_v44  ;;  %vm105_vm4 = vweird.f32 %v98_v44 }
 0x12d   :  { %v172_v45 = vpop.eup %171 }
 0x12e   :  { %v100_v46 = vmul.f32 %v172_v45, %v98_v44  ;;  %vm106_vm3 = vweird.f32 %v172_v45 }
 0x12f   :  { %vm107_vm5 = vmor %vm105_vm4, %vm106_vm3 }
 0x130   :  { %v101_v47 = vmul.f32 %v172_v45, %v100_v46 }
 0x132   :  { %v102_v48 = vmul.f32 0.5, %v101_v47 }
 0x134   :  { %v103_v49 = vsub.f32 1.5, %v102_v48 }
 0x136   :  { %v104_v51 = vmul.f32 %v172_v45, %v103_v49 }
 0x138   :  { %v108_v52 = vsel %vm107_vm5, %v172_v45, %v104_v51 }
 0x139   :  { %v109_v53 = vmul.f32 %v108_v52, %v97_v50 }
 0x13b   :  { %112 = vperm.xlu2 %168, %v109_v53  }
 0x143   :  { %169 = vset.pattern.permute.xlu2 %v230_v38 }
 0x144   :  { %123 = vperm.xlu2 %169, %v97_v50  }
 0x195   :  { %v113_v54 = vpop.permute.xlu2 %112 }
 0x196   :  { %v117_v55 = vperm.slane %v113_v54, %v63_v18 }
 0x198   :  { %v119_v57 = vmul.f32 %v117_v55, %v66_v22  ;;  %v120_v58 = vmul.f32 %v117_v55, %v67_v23 }
 0x19e   :  { %v124_v56 = vpop.permute.xlu2 %123 }
 0x19f   :  { %v128_v59 = vperm.slane %v124_v56, %v63_v18 }
 0x1a1   :  { %v130_v60 = vadd.f32 %v128_v59, %v119_v57  ;;  %v131_v61 = vadd.f32 %v128_v59, %v120_v58 }
 0x1a3   :  { %132 = vst [vmem:[#allocation5] sm:$0xff] %v130_v60 }
 0x1a4   :  { %133 = vst [vmem:[#allocation5 + $0x8] sm:$0xff] %v131_v61 }
 0x1a5   :  { %150 = dma.vmem_to_hbm [thread:$0]  %s143_s24, 256, %s145_s1, [#allocation4], %s226_s17, %s226_s17, %s227_s18  }
 0x1a6   :  { %223 = dma.done.wait [#allocation4], 256  }
 0x1a7   :  { %224 = vsyncadd [#allocation4], 4294967040 }
 0x1a8   :  { %159 = vsyncpa [#allocation3], 1 }
 0x1a9   :  { %160 = vsyncpa [#allocation4], 1 }

</bundles_post_ra>
